<compile_context>
chip_gen: v7x
topology: tpu7x:2x2x1
jax: 0.10.0
libtpu: 0.0.40
codegen_flags: <defaults>
</compile_context>

<pallas_src>
import jax
import jax.numpy as jnp
from jax.experimental import pallas as pl
from jax.experimental.pallas import tpu as pltpu

HIDDEN = 128
LANE = 128


def _round_up(v, m):
    return (v + m - 1) // m * m


def _dueling_kernel(x_ref,
                    w1_ref, b1_ref, w2_ref, b2_ref,      # input_network
                    wh1_ref, bh1_ref,                    # fused value||adv hidden layer
                    wh2_ref, bh2_ref,                    # fused output head (v+a | a | 0)
                    head_ref):
    bf16 = jnp.bfloat16

    # input_network: Linear(S,128) -> ReLU -> Linear(128,128) -> ReLU
    h1 = jnp.dot(x_ref[...], w1_ref[...], preferred_element_type=jnp.float32)
    h1 = jnp.maximum(h1 + b1_ref[...], 0.0)
    h2 = jnp.dot(h1.astype(bf16), w2_ref[...], preferred_element_type=jnp.float32)
    feats = jnp.maximum(h2 + b2_ref[...], 0.0)

    # fused hidden layer of both heads: (TILE_B, 256) = [value_hidden | adv_hidden]
    hh = jnp.dot(feats.astype(bf16), wh1_ref[...], preferred_element_type=jnp.float32)
    hh = jnp.maximum(hh + bh1_ref[...], 0.0)

    # fused output head (lane-dense, 128-wide, single MXU matmul):
    #   cols 0..A-1  = value + advantage_j
    #   cols A..2A-1 = advantage_j (for the global mean in the wrapper)
    #   rest         = 0
    head = jnp.dot(hh.astype(bf16), wh2_ref[...], preferred_element_type=jnp.float32)
    head_ref[...] = head + bh2_ref[...]


def prepare_params(p):
    """One-time prep: fuse the two heads (and the dueling value-add) and cast
    matmul weights to bf16."""
    n_actions = p["wa2"].shape[1]
    head_w = _round_up(max(2 * n_actions, 1), LANE)

    # Fused hidden layer: [Wv1 | Wa1] -> (128, 256), biases -> (1, 256).
    wh1 = jnp.concatenate([p["wv1"], p["wa1"]], axis=1)
    bh1 = jnp.concatenate([p["bv1"], p["ba1"]], axis=1)

    # Fused output head, zero-padded to 128 lanes:
    #   cols 0..A-1  : top half = Wv2 replicated, bottom half = Wa2  -> v + a_j
    #   cols A..2A-1 : bottom half = Wa2 only                        -> a_j
    wh2 = jnp.zeros((2 * HIDDEN, head_w), jnp.float32)
    wh2 = wh2.at[:HIDDEN, 0:n_actions].set(
        jnp.broadcast_to(p["wv2"], (HIDDEN, n_actions)))
    wh2 = wh2.at[HIDDEN:, 0:n_actions].set(p["wa2"])
    wh2 = wh2.at[HIDDEN:, n_actions:2 * n_actions].set(p["wa2"])

    bh2 = jnp.zeros((1, head_w), jnp.float32)
    bh2 = bh2.at[:, 0:n_actions].set(p["bv2"] + p["ba2"])
    bh2 = bh2.at[:, n_actions:2 * n_actions].set(p["ba2"])

    bf = lambda a: a.astype(jnp.bfloat16)
    return dict(
        w1=bf(p["w1"]), b1=p["b1"],
        w2=bf(p["w2"]), b2=p["b2"],
        wh1=bf(wh1), bh1=bh1,
        wh2=bf(wh2), bh2=bh2,
        n_actions=n_actions, head_w=head_w,
    )


def dueling_q_forward(x, prep, *, tile_b=128):
    """x: (B, S) float32. prep: output of prepare_params. Returns (B, A) f32."""
    batch, n_states = x.shape
    n_actions = prep["n_actions"]
    head_w = prep["head_w"]

    xb = x.astype(jnp.bfloat16)
    pad_b = _round_up(batch, tile_b)
    if pad_b != batch:
        xb = jnp.pad(xb, ((0, pad_b - batch), (0, 0)))

    def pinned(shape):
        return pl.BlockSpec(shape, lambda i: (0, 0))

    head = pl.pallas_call(
        _dueling_kernel,
        out_shape=jax.ShapeDtypeStruct((pad_b, head_w), jnp.float32),
        grid=(pad_b // tile_b,),
        in_specs=[
            pl.BlockSpec((tile_b, n_states), lambda i: (i, 0)),    # x: tiled over batch
            pinned((n_states, HIDDEN)), pinned((1, HIDDEN)),        # w1, b1 (resident)
            pinned((HIDDEN, HIDDEN)),   pinned((1, HIDDEN)),        # w2, b2
            pinned((HIDDEN, 2 * HIDDEN)), pinned((1, 2 * HIDDEN)),  # fused hidden head
            pinned((2 * HIDDEN, head_w)), pinned((1, head_w)),      # fused output head
        ],
        out_specs=pl.BlockSpec((tile_b, head_w), lambda i: (i, 0)),
        compiler_params=pltpu.CompilerParams(
            dimension_semantics=("parallel",)),
    )(xb, prep["w1"], prep["b1"], prep["w2"], prep["b2"],
      prep["wh1"], prep["bh1"], prep["wh2"], prep["bh2"])

    q_plus_v = head[:batch, 0:n_actions]               # values + advantages
    adv = head[:batch, n_actions:2 * n_actions]        # raw advantages
    # Dueling combine: torch-default GLOBAL mean over all B*A advantage elements
    # (done here so batch tiling above cannot change the reduction semantics).
    return q_plus_v - jnp.mean(adv)


def init_params(key, n_states, n_actions):
    """Deterministic synthetic parameters (shapes match the torch module,
    weights stored as (in, out) i.e. transposed vs nn.Linear)."""
    ks = jax.random.split(key, 12)

    def lin(kw, kb, fan_in, fan_out):
        bound = 1.0 / jnp.sqrt(jnp.float32(fan_in))
        w = jax.random.uniform(kw, (fan_in, fan_out), jnp.float32, -bound, bound)
        b = jax.random.uniform(kb, (1, fan_out), jnp.float32, -bound, bound)
        return w, b

    w1, b1 = lin(ks[0], ks[1], n_states, HIDDEN)
    w2, b2 = lin(ks[2], ks[3], HIDDEN, HIDDEN)
    wv1, bv1 = lin(ks[4], ks[5], HIDDEN, HIDDEN)
    wv2, bv2 = lin(ks[6], ks[7], HIDDEN, 1)
    wa1, ba1 = lin(ks[8], ks[9], HIDDEN, HIDDEN)
    wa2, ba2 = lin(ks[10], ks[11], HIDDEN, n_actions)

    return dict(w1=w1, b1=b1, w2=w2, b2=b2,
                wv1=wv1, bv1=bv1, wv2=wv2, bv2=bv2,
                wa1=wa1, ba1=ba1, wa2=wa2, ba2=ba2)


def reference_forward_f32(x, p):
    """Pure-JAX f32 reference mirroring the PyTorch module."""
    relu = lambda t: jnp.maximum(t, 0.0)
    feats = relu(relu(x @ p["w1"] + p["b1"]) @ p["w2"] + p["b2"])
    values = relu(feats @ p["wv1"] + p["bv1"]) @ p["wv2"] + p["bv2"]
    adv = relu(feats @ p["wa1"] + p["ba1"]) @ p["wa2"] + p["ba2"]
    return values + (adv - jnp.mean(adv))


def reference_forward_bf16(x, p):
    """Reference with the same bf16-operand / f32-accumulate matmul precision."""
    dot = lambda a, b: jnp.dot(a.astype(jnp.bfloat16), b.astype(jnp.bfloat16),
                               preferred_element_type=jnp.float32)
    relu = lambda t: jnp.maximum(t, 0.0)
    feats = relu(dot(relu(dot(x, p["w1"]) + p["b1"]), p["w2"]) + p["b2"])
    values = dot(relu(dot(feats, p["wv1"]) + p["bv1"]), p["wv2"]) + p["bv2"]
    adv = dot(relu(dot(feats, p["wa1"]) + p["ba1"]), p["wa2"]) + p["ba2"]
    return values + (adv - jnp.mean(adv))


if __name__ == "__main__":
    n_states, n_actions, batch = 16, 4, 8

    key = jax.random.PRNGKey(0)
    k_x, k_p = jax.random.split(key)
    x = jax.random.normal(k_x, (batch, n_states), jnp.float32)
    params = init_params(k_p, n_states, n_actions)
    prep = prepare_params(params)

    out = dueling_q_forward(x, prep, tile_b=128)
    out = jax.block_until_ready(out)

    assert out.shape == (batch, n_actions)
    ref_bf16 = reference_forward_bf16(x, params)
    ref_f32 = reference_forward_f32(x, params)
    assert jnp.allclose(out, ref_bf16, atol=1e-3, rtol=1e-3), "mismatch vs bf16 reference"
    assert jnp.allclose(out, ref_f32, atol=1e-1, rtol=1e-1), "mismatch vs f32 reference"

    print("KERNEL_OK")
</pallas_src>

<mosaic_0001>
module attributes {stable_mosaic.version = 11 : i64} {
  func.func @_dueling_kernel(%arg0: i32, %arg1: memref<128x16xbf16, #tpu.memory_space<vmem>>, %arg2: memref<16x128xbf16, #tpu.memory_space<vmem>>, %arg3: memref<1x128xf32, #tpu.memory_space<vmem>>, %arg4: memref<128x128xbf16, #tpu.memory_space<vmem>>, %arg5: memref<1x128xf32, #tpu.memory_space<vmem>>, %arg6: memref<128x256xbf16, #tpu.memory_space<vmem>>, %arg7: memref<1x256xf32, #tpu.memory_space<vmem>>, %arg8: memref<256x128xbf16, #tpu.memory_space<vmem>>, %arg9: memref<1x128xf32, #tpu.memory_space<vmem>>, %arg10: memref<128x128xf32, #tpu.memory_space<vmem>>) attributes {dimension_semantics = [#tpu.dimension_semantics<parallel>], iteration_bounds = array<i64: 1>, scalar_prefetch = 0 : i64, scratch_operands = 0 : i64, tpu.core_type = #tpu.core_type<tc>, window_params = [{transform_indices = @transform_0, window_bounds = array<i64: 128, 16>}, {pipeline_mode = #tpu.pipeline_mode<synchronous>, transform_indices = @transform_1, window_bounds = array<i64: 16, 128>}, {pipeline_mode = #tpu.pipeline_mode<synchronous>, transform_indices = @transform_2, window_bounds = array<i64: 1, 128>}, {pipeline_mode = #tpu.pipeline_mode<synchronous>, transform_indices = @transform_3, window_bounds = array<i64: 128, 128>}, {pipeline_mode = #tpu.pipeline_mode<synchronous>, transform_indices = @transform_4, window_bounds = array<i64: 1, 128>}, {pipeline_mode = #tpu.pipeline_mode<synchronous>, transform_indices = @transform_5, window_bounds = array<i64: 128, 256>}, {pipeline_mode = #tpu.pipeline_mode<synchronous>, transform_indices = @transform_6, window_bounds = array<i64: 1, 256>}, {pipeline_mode = #tpu.pipeline_mode<synchronous>, transform_indices = @transform_7, window_bounds = array<i64: 256, 128>}, {pipeline_mode = #tpu.pipeline_mode<synchronous>, transform_indices = @transform_8, window_bounds = array<i64: 1, 128>}, {transform_indices = @transform_9, window_bounds = array<i64: 128, 128>}]} {
    %c0 = arith.constant 0 : index
    %c0_0 = arith.constant 0 : index
    %0 = vector.load %arg1[%c0, %c0_0] : memref<128x16xbf16, #tpu.memory_space<vmem>>, vector<128x16xbf16>
    %c0_1 = arith.constant 0 : index
    %c0_2 = arith.constant 0 : index
    %1 = vector.load %arg2[%c0_1, %c0_2] : memref<16x128xbf16, #tpu.memory_space<vmem>>, vector<16x128xbf16>
    %cst = arith.constant dense<0.000000e+00> : vector<128x128xf32>
    %2 = tpu.matmul %0, %1, %cst {dimension_numbers = #tpu.dot_dimension_numbers<[1], [0], [0], [1], [0, 0, 1, 1], [], []>} : vector<128x16xbf16>, vector<16x128xbf16>, vector<128x128xf32> -> vector<128x128xf32>
    %c0_3 = arith.constant 0 : index
    %c0_4 = arith.constant 0 : index
    %3 = vector.load %arg3[%c0_3, %c0_4] : memref<1x128xf32, #tpu.memory_space<vmem>>, vector<1x128xf32>
    %4 = vector.broadcast %3 : vector<1x128xf32> to vector<128x128xf32>
    %5 = arith.addf %2, %4 : vector<128x128xf32>
    %cst_5 = arith.constant 0.000000e+00 : f32
    %6 = vector.broadcast %cst_5 : f32 to vector<128x128xf32>
    %7 = arith.maximumf %5, %6 : vector<128x128xf32>
    %8 = arith.truncf %7 : vector<128x128xf32> to vector<128x128xbf16>
    %c0_6 = arith.constant 0 : index
    %c0_7 = arith.constant 0 : index
    %9 = vector.load %arg4[%c0_6, %c0_7] : memref<128x128xbf16, #tpu.memory_space<vmem>>, vector<128x128xbf16>
    %cst_8 = arith.constant dense<0.000000e+00> : vector<128x128xf32>
    %10 = tpu.matmul %8, %9, %cst_8 {dimension_numbers = #tpu.dot_dimension_numbers<[1], [0], [0], [1], [0, 0, 1, 1], [], []>} : vector<128x128xbf16>, vector<128x128xbf16>, vector<128x128xf32> -> vector<128x128xf32>
    %c0_9 = arith.constant 0 : index
    %c0_10 = arith.constant 0 : index
    %11 = vector.load %arg5[%c0_9, %c0_10] : memref<1x128xf32, #tpu.memory_space<vmem>>, vector<1x128xf32>
    %12 = vector.broadcast %11 : vector<1x128xf32> to vector<128x128xf32>
    %13 = arith.addf %10, %12 : vector<128x128xf32>
    %cst_11 = arith.constant 0.000000e+00 : f32
    %14 = vector.broadcast %cst_11 : f32 to vector<128x128xf32>
    %15 = arith.maximumf %13, %14 : vector<128x128xf32>
    %16 = arith.truncf %15 : vector<128x128xf32> to vector<128x128xbf16>
    %c0_12 = arith.constant 0 : index
    %c0_13 = arith.constant 0 : index
    %17 = vector.load %arg6[%c0_12, %c0_13] : memref<128x256xbf16, #tpu.memory_space<vmem>>, vector<128x256xbf16>
    %cst_14 = arith.constant dense<0.000000e+00> : vector<128x256xf32>
    %18 = tpu.matmul %16, %17, %cst_14 {dimension_numbers = #tpu.dot_dimension_numbers<[1], [0], [0], [1], [0, 0, 1, 1], [], []>} : vector<128x128xbf16>, vector<128x256xbf16>, vector<128x256xf32> -> vector<128x256xf32>
    %c0_15 = arith.constant 0 : index
    %c0_16 = arith.constant 0 : index
    %19 = vector.load %arg7[%c0_15, %c0_16] : memref<1x256xf32, #tpu.memory_space<vmem>>, vector<1x256xf32>
    %20 = vector.broadcast %19 : vector<1x256xf32> to vector<128x256xf32>
    %21 = arith.addf %18, %20 : vector<128x256xf32>
    %cst_17 = arith.constant 0.000000e+00 : f32
    %22 = vector.broadcast %cst_17 : f32 to vector<128x256xf32>
    %23 = arith.maximumf %21, %22 : vector<128x256xf32>
    %24 = arith.truncf %23 : vector<128x256xf32> to vector<128x256xbf16>
    %c0_18 = arith.constant 0 : index
    %c0_19 = arith.constant 0 : index
    %25 = vector.load %arg8[%c0_18, %c0_19] : memref<256x128xbf16, #tpu.memory_space<vmem>>, vector<256x128xbf16>
    %cst_20 = arith.constant dense<0.000000e+00> : vector<128x128xf32>
    %26 = tpu.matmul %24, %25, %cst_20 {dimension_numbers = #tpu.dot_dimension_numbers<[1], [0], [0], [1], [0, 0, 1, 1], [], []>} : vector<128x256xbf16>, vector<256x128xbf16>, vector<128x128xf32> -> vector<128x128xf32>
    %c0_21 = arith.constant 0 : index
    %c0_22 = arith.constant 0 : index
    %27 = vector.load %arg9[%c0_21, %c0_22] : memref<1x128xf32, #tpu.memory_space<vmem>>, vector<1x128xf32>
    %28 = vector.broadcast %27 : vector<1x128xf32> to vector<128x128xf32>
    %29 = arith.addf %26, %28 : vector<128x128xf32>
    %c0_23 = arith.constant 0 : index
    %c0_24 = arith.constant 0 : index
    %30 = vector.load %arg10[%c0_23, %c0_24] : memref<128x128xf32, #tpu.memory_space<vmem>>, vector<128x128xf32>
    tpu.vector_store %arg10[%c0_23, %c0_24], %29 {strides = array<i32>} : memref<128x128xf32, #tpu.memory_space<vmem>>, vector<128x128xf32>,
    return
  }
  func.func @transform_0(%arg0: i32) -> (i32, i32) {
    %c0_i32 = arith.constant 0 : i32
    %c0_i32_0 = arith.constant 0 : i32
    return %arg0, %c0_i32 : i32, i32
  }
  func.func @transform_1(%arg0: i32) -> (i32, i32) {
    %c0_i32 = arith.constant 0 : i32
    %c0_i32_0 = arith.constant 0 : i32
    %c0_i32_1 = arith.constant 0 : i32
    return %c0_i32, %c0_i32_0 : i32, i32
  }
  func.func @transform_2(%arg0: i32) -> (i32, i32) {
    %c0_i32 = arith.constant 0 : i32
    %c0_i32_0 = arith.constant 0 : i32
    %c0_i32_1 = arith.constant 0 : i32
    return %c0_i32, %c0_i32_0 : i32, i32
  }
  func.func @transform_3(%arg0: i32) -> (i32, i32) {
    %c0_i32 = arith.constant 0 : i32
    %c0_i32_0 = arith.constant 0 : i32
    %c0_i32_1 = arith.constant 0 : i32
    return %c0_i32, %c0_i32_0 : i32, i32
  }
  func.func @transform_4(%arg0: i32) -> (i32, i32) {
    %c0_i32 = arith.constant 0 : i32
    %c0_i32_0 = arith.constant 0 : i32
    %c0_i32_1 = arith.constant 0 : i32
    return %c0_i32, %c0_i32_0 : i32, i32
  }
  func.func @transform_5(%arg0: i32) -> (i32, i32) {
    %c0_i32 = arith.constant 0 : i32
    %c0_i32_0 = arith.constant 0 : i32
    %c0_i32_1 = arith.constant 0 : i32
    return %c0_i32, %c0_i32_0 : i32, i32
  }
  func.func @transform_6(%arg0: i32) -> (i32, i32) {
    %c0_i32 = arith.constant 0 : i32
    %c0_i32_0 = arith.constant 0 : i32
    %c0_i32_1 = arith.constant 0 : i32
    return %c0_i32, %c0_i32_0 : i32, i32
  }
  func.func @transform_7(%arg0: i32) -> (i32, i32) {
    %c0_i32 = arith.constant 0 : i32
    %c0_i32_0 = arith.constant 0 : i32
    %c0_i32_1 = arith.constant 0 : i32
    return %c0_i32, %c0_i32_0 : i32, i32
  }
  func.func @transform_8(%arg0: i32) -> (i32, i32) {
    %c0_i32 = arith.constant 0 : i32
    %c0_i32_0 = arith.constant 0 : i32
    %c0_i32_1 = arith.constant 0 : i32
    return %c0_i32, %c0_i32_0 : i32, i32
  }
  func.func @transform_9(%arg0: i32) -> (i32, i32) {
    %c0_i32 = arith.constant 0 : i32
    %c0_i32_0 = arith.constant 0 : i32
    return %arg0, %c0_i32 : i32, i32
  }
}

</mosaic_0001>

<bundles_post_ra>
// kernel: tpu_custom_call.1
= control target key start
LH: loop header
LB: loop body
LE: loop exit
PB: predicated region body
PF: predicated region fallthrough
CT: control target
= control target key end

     0   :  { %14 = vsyncpa [#allocation3], 0  ;;  %s1617_s0 = inlined_call_operand.vmem [shape: bf16[128,16], index: 0, kind: input, shape index: {}]   ;;  %s1618_s1 = inlined_call_operand.vmem [shape: bf16[16,128], index: 1, kind: input, shape index: {}]   ;;  %s1619_s2 = inlined_call_operand.vmem [shape: f32[1,128], index: 2, kind: input, shape index: {}]   ;;  %s1620_s3 = inlined_call_operand.vmem [shape: bf16[128,128], index: 3, kind: input, shape index: {}]   ;;  %s1621_s4 = inlined_call_operand.vmem [shape: f32[1,128], index: 4, kind: input, shape index: {}]   ;;  %s1622_s5 = inlined_call_operand.hbm [shape: bf16[128,256], index: 5, kind: input, shape index: {}]   ;;  %s1623_s6 = inlined_call_operand.vmem [shape: f32[1,256], index: 6, kind: input, shape index: {}]   ;;  %s1624_s7 = inlined_call_operand.hbm [shape: bf16[256,128], index: 7, kind: input, shape index: {}]   ;;  %s1625_s8 = inlined_call_operand.vmem [shape: f32[1,128], index: 8, kind: input, shape index: {}]   ;;  %s1626_s9 = inlined_call_operand.hbm [shape: f32[128,128], index: 9, kind: output, shape index: {}]  }
   0x1   :  { %15 = vsyncpa [#allocation6], 0 }
   0x2   :  { %16 = vsyncpa [#allocation4], 0  ;;  %s1358_s30 = smov [#allocation2]   ;;  %s1286_s13 = scalar_lea.hbm %s1622_s5, 2048 }
   0x3   :  { %s32_s10 = sshll.u32 %s1358_s30, 4  ;;  %p1287_p0 = scmp.ne.s32.totalorder %s1622_s5, %s1286_s13  ;;  %s33_s10 = int_to_ptr.vmem [resolvable:$true] %s32_s10 }
   0x4   :  { %p1290_p1 = scmp.lt.u32.totalorder %s1286_s13, %s1622_s5 }
   0x6   :  { %p1292_p2 = pnand %p1290_p1, %p1287_p0 }
   0x8   :  { %1295 = shalt.err (!%p1292_p2)
}
   0x9   :  { %s1296_s18 = scalar_lea.vmem %s33_s10, 2048  ;;  %p1301_p4 = scmp.lt.s32.totalorder %s33_s10, %s33_s10 }
   0xa   :  { %p1297_p3 = scmp.ne.s32.totalorder %s33_s10, %s1296_s18  ;;  %p1302_p5 = scmp.lt.s32.totalorder %s1296_s18, %s1296_s18 }
   0xc   :  { %p1303_p6 = por %p1302_p5, %p1301_p4 }
   0xe   :  { %p1304_p7 = pnand %p1303_p6, %p1297_p3 }
  0x10   :  { %1307 = shalt.err (!%p1304_p7)
}
  0x11   :  { %s1359_s19 = smov 128   ;;  %s1360_s20 = smov 8  }
  0x12   :  { %38 = dma.hbm_to_vmem [thread:$0]  %s1622_s5, 2048, %s33_s10, [#allocation3], %s1359_s19, %s1359_s19, %s1360_s20  }
  0x13   :  { %s1361_s23 = smov [#allocation5]   ;;  %s1308_s27 = scalar_lea.hbm %s1624_s7, 2048 }
  0x14   :  { %s46_s24 = sshll.u32 %s1361_s23, 4  ;;  %p1309_p8 = scmp.ne.s32.totalorder %s1624_s7, %s1308_s27  ;;  %s47_s24 = int_to_ptr.vmem [resolvable:$true] %s46_s24 }
  0x15   :  { %p1312_p9 = scmp.lt.u32.totalorder %s1308_s27, %s1624_s7 }
  0x17   :  { %p1314_p10 = pnand %p1312_p9, %p1309_p8 }
  0x19   :  { %1317 = shalt.err (!%p1314_p10)
}
  0x1a   :  { %s1318_s12 = scalar_lea.vmem %s47_s24, 2048  ;;  %p1323_p12 = scmp.lt.s32.totalorder %s47_s24, %s47_s24 }
  0x1b   :  { %p1319_p11 = scmp.ne.s32.totalorder %s47_s24, %s1318_s12  ;;  %p1324_p13 = scmp.lt.s32.totalorder %s1318_s12, %s1318_s12 }
  0x1d   :  { %p1325_p0 = por %p1324_p13, %p1323_p12 }
  0x1f   :  { %p1326_p1 = pnand %p1325_p0, %p1319_p11 }
  0x21   :  { %1329 = shalt.err (!%p1326_p1)
}
  0x22   :  { %s1362_s5 = smov 64   ;;  %s1363_s10 = smov 4  }
  0x23   :  { %52 = dma.hbm_to_vmem [thread:$0]  %s1624_s7, 2048, %s47_s24, [#allocation6], %s1362_s5, %s1362_s5, %s1363_s10  }
  0x24   :  { %1352 = dma.done.wait [#allocation3], 2048  }
  0x25   :  { %1353 = vsyncadd [#allocation3], 4294965248 }
  0x26   :  { %1354 = dma.done.wait [#allocation6], 2048  }
  0x27   :  { %1355 = vsyncadd [#allocation6], 4294965248  ;;  %v1229_v0 = vld [vmem:[%s1618_s1] sm:$0xff]   ;;  %vm133_vm0 = vcmask 130048   ;;  %v1231_v2 = vld [vmem:[%s1617_s0 + $0x8] sm:$0xff]  }
  0x28   :  { %v1230_v1 = vld [vmem:[%s1617_s0] sm:$0xff]   ;;  %1155 = vmatprep.subr.bf16.mxu0 %v1229_v0  ;;  %v1232_v3 = vld [vmem:[%s1617_s0 + $0x10] sm:$0xff]   ;;  %v1233_v4 = vld [vmem:[%s1617_s0 + $0x18] sm:$0xff]  }
  0x29   :  { %1156 = vmatpush3.bf16.msra.mxu0 %v1229_v0  ;;  %1157 = vmatprep.mubr.msk.bf16.mxu0 %vm133_vm0, %v1230_v1  ;;  %v1238_v5 = vld [vmem:[%s1620_s3] sm:$0xff]   ;;  %v1239_v6 = vld [vmem:[%s1620_s3 + $0x8] sm:$0xff]   ;;  %v1240_v8 = vld [vmem:[%s1620_s3 + $0x10] sm:$0xff]  }
  0x2a   :  { %v1234_v7 = vld [vmem:[%s1617_s0 + $0x20] sm:$0xff]   ;;  %1173 = vmatprep.subr.bf16.mxu1 %v1238_v5  ;;  %v1241_v9 = vld [vmem:[%s1620_s3 + $0x18] sm:$0xff]   ;;  %v1235_v10 = vld [vmem:[%s1617_s0 + $0x28] sm:$0xff]  }
  0x2b   :  { %1174 = vmatpush3.bf16.msra.mxu1 %v1238_v5  ;;  %v1236_v11 = vld [vmem:[%s1617_s0 + $0x30] sm:$0xff]   ;;  %v1242_v12 = vld [vmem:[%s1620_s3 + $0x20] sm:$0xff]   ;;  %v1243_v13 = vld [vmem:[%s1620_s3 + $0x28] sm:$0xff]  }
  0x2c   :  { %1158 = vmatmul.mubr.msk.bf16.vlgmr.msra.gmra.mrb[0].mxu0 %vm133_vm0, %v1231_v2  ;;  %1175 = vmatprep.subr.bf16.mxu1 %v1239_v6  ;;  %v1237_v14 = vld [vmem:[%s1617_s0 + $0x38] sm:$0xff]   ;;  %v1244_v15 = vld [vmem:[%s1620_s3 + $0x30] sm:$0xff]   ;;  %v1006_v29 = vld [vmem:[%s1619_s2] ss:$0 sm:$0xff] }
  0x2d   :  { %1161 = vmatprep.mubr.msk.bf16.mxu0 %vm133_vm0, %v1232_v3  ;;  %v1245_v16 = vld [vmem:[%s1620_s3 + $0x38] sm:$0xff]   ;;  %v1246_v17 = vld [vmem:[#allocation2] ss:$8 sps:$4 sm:$0xff]   ;;  %v1248_v18 = vld [vmem:[#allocation2 + $0x4] ss:$8 sps:$4 sm:$0xff]  }
  0x2e   :  { %v1251_v19 = vld [vmem:[#allocation2 + $0x14] ss:$8 sps:$4 sm:$0xff]   ;;  %579 = vmatprep.subr.bf16.mxu0 %v1248_v18  ;;  %v1249_v20 = vld [vmem:[#allocation2 + $0x10] ss:$8 sps:$4 sm:$0xff]   ;;  %v1254_v21 = vld [vmem:[#allocation2 + $0x24] ss:$8 sps:$4 sm:$0xff]  }
  0x2f   :  { %1176 = vmatpush3.bf16.msra.mxu1 %v1239_v6  ;;  %580 = vmatpush1.bf16.msra.mxu0 %v1246_v17  ;;  %v1252_v22 = vld [vmem:[#allocation2 + $0x20] ss:$8 sps:$4 sm:$0xff]   ;;  %v1257_v23 = vld [vmem:[#allocation2 + $0x34] ss:$8 sps:$4 sm:$0xff]   ;;  %v1255_v24 = vld [vmem:[#allocation2 + $0x30] ss:$8 sps:$4 sm:$0xff]  }
  0x30   :  { %1177 = vmatprep.subr.bf16.mxu1 %v1240_v8  ;;  %581 = vmatprep.subr.bf16.mxu0 %v1251_v19  ;;  %v1260_v25 = vld [vmem:[#allocation2 + $0x44] ss:$8 sps:$4 sm:$0xff]   ;;  %v1258_v26 = vld [vmem:[#allocation2 + $0x40] ss:$8 sps:$4 sm:$0xff]   ;;  %v1263_v27 = vld [vmem:[#allocation2 + $0x54] ss:$8 sps:$4 sm:$0xff]  }
  0x31   :  { %v1261_v28 = vld [vmem:[#allocation2 + $0x50] ss:$8 sps:$4 sm:$0xff]  }
  0x33   :  { %1178 = vmatpush3.bf16.msra.mxu1 %v1240_v8  ;;  %582 = vmatpush1.bf16.msra.mxu0 %v1249_v20 }
  0x34   :  { %1162 = vmatmul.mubr.msk.bf16.gmra.mrb[4].mxu0 %vm133_vm0, %v1233_v4  ;;  %1179 = vmatprep.subr.bf16.mxu1 %v1241_v9 }
  0x35   :  { %1165 = vmatprep.mubr.msk.bf16.mxu0 %vm133_vm0, %v1234_v7  ;;  %583 = vmatprep.subr.bf16.mxu0 %v1254_v21 }
  0x37   :  { %1180 = vmatpush3.bf16.msra.mxu1 %v1241_v9  ;;  %584 = vmatpush1.bf16.msra.mxu0 %v1252_v22  ;;  %v1266_v22 = vld [vmem:[#allocation2 + $0x64] ss:$8 sps:$4 sm:$0xff]  }
  0x38   :  { %1181 = vmatprep.subr.bf16.mxu1 %v1242_v12  ;;  %585 = vmatprep.subr.bf16.mxu0 %v1257_v23  ;;  %v1264_v23 = vld [vmem:[#allocation2 + $0x60] ss:$8 sps:$4 sm:$0xff]  }
  0x3b   :  { %1182 = vmatpush3.bf16.msra.mxu1 %v1242_v12  ;;  %586 = vmatpush1.bf16.msra.mxu0 %v1255_v24  ;;  %v1269_v24 = vld [vmem:[#allocation2 + $0x74] ss:$8 sps:$4 sm:$0xff]  }
  0x3c   :  { %1166 = vmatmul.mubr.msk.bf16.gmra.mrb[8].mxu0 %vm133_vm0, %v1235_v10  ;;  %1183 = vmatprep.subr.bf16.mxu1 %v1243_v13 }
  0x3d   :  { %1169 = vmatprep.mubr.msk.bf16.mxu0 %vm133_vm0, %v1236_v11  ;;  %587 = vmatprep.subr.bf16.mxu0 %v1260_v25  ;;  %v1267_v25 = vld [vmem:[#allocation2 + $0x70] ss:$8 sps:$4 sm:$0xff]  }
  0x3f   :  { %1184 = vmatpush3.bf16.msra.mxu1 %v1243_v13  ;;  %588 = vmatpush1.bf16.msra.mxu0 %v1258_v26  ;;  %v1364_v26 = vmov 0  }
  0x40   :  { %1185 = vmatprep.subr.bf16.mxu1 %v1244_v15  ;;  %589 = vmatprep.subr.bf16.mxu0 %v1263_v27  ;;  %v1270_v27 = vld [vmem:[#allocation5 + $0x40] sm:$0xff]  }
  0x43   :  { %1186 = vmatpush3.bf16.msra.mxu1 %v1244_v15  ;;  %590 = vmatpush1.bf16.msra.mxu0 %v1261_v28  ;;  %v1271_v28 = vld [vmem:[#allocation5] sm:$0xff]  }
  0x44   :  { %1170 = vmatmul.mubr.msk.bf16.gmra.mrb[12].mxu0 %vm133_vm0, %v1237_v14  ;;  %1187 = vmatprep.subr.bf16.mxu1 %v1245_v16 }
  0x45   :  { %591 = vmatprep.subr.bf16.mxu0 %v1266_v22  ;;  %611 = vmatprep.mubr.bf16.mxu0 %v1364_v26 }
  0x47   :  { %1188 = vmatpush3.bf16.msra.mxu1 %v1245_v16  ;;  %592 = vmatpush1.bf16.msra.mxu0 %v1264_v23 }
  0x48   :  { %593 = vmatprep.subr.bf16.mxu0 %v1269_v24  ;;  %1205 = vmatprep.subr.bf16.mxu1 %v1270_v27 }
  0x4b   :  { %594 = vmatpush1.bf16.msra.mxu0 %v1267_v25 }
  0x4c   :  { %1091 = vmatprep.subr.bf16.mxu0 %v1270_v27 }
  0xff   :  { %v1159_v30 = vpop.f32.mrb[0].mxu0 }
 0x100   :  { %v201_v31 = vadd.f32 %v1159_v30, %v1006_v29  ;;  %v192_v32 = vpop.f32.mrb[1].mxu0  ;;  %v1273_v30 = vld [vmem:[#allocation5 + $0x8] sm:$0xff]  }
 0x101   :  { %v193_v33 = vadd.f32 %v1006_v29, %v192_v32  ;;  %v1160_v34 = vpop.f32.mrb[2].mxu0  ;;  %v1275_v32 = vld [vmem:[#allocation5 + $0x10] sm:$0xff]  }
 0x102   :  { %v204_v35 = vadd.f32 %v1160_v34, %v1006_v29  ;;  %v195_v36 = vpop.f32.mrb[3].mxu0  ;;  %v257_v38 = vmax.f32 %v201_v31, 0.0  ;;  %v1274_v31 = vld [vmem:[#allocation5 + $0x50] sm:$0xff]   ;;  %v1277_v34 = vld [vmem:[#allocation5 + $0x18] sm:$0xff]  }
 0x103   :  { %v196_v37 = vadd.f32 %v1006_v29, %v195_v36  ;;  %v255_v40 = vmax.f32 %v193_v33, 0.0  ;;  %v1276_v33 = vld [vmem:[#allocation5 + $0x58] sm:$0xff]   ;;  %v1506_v36 = vld [vmem:[#allocation5 + $0x20] sm:$0xff]  }
 0x104   :  { %v258_v39 = vmax.f32 %v204_v35, 0.0  ;;  %v1278_v35 = vld [vmem:[#allocation5 + $0x60] sm:$0xff]  }
 0x105   :  { %v256_v41 = vmax.f32 %v196_v37, 0.0  ;;  %v1508_v37 = vld [vmem:[#allocation5 + $0x68] sm:$0xff]  }
 0x106   :  { %v272_v42 = vpack.c.bf16 %v258_v39, %v257_v38  ;;  %v1515_v38 = vld [vmem:[%s1621_s4] ss:$0 sm:$0xff] }
 0x107   :  { %v1163_v43 = vpop.f32.mrb[4].mxu0  ;;  %v271_v44 = vpack.c.bf16 %v256_v41, %v255_v40 }
 0x108   :  { %v217_v45 = vadd.f32 %v1163_v43, %v1006_v29  ;;  %v208_v46 = vpop.f32.mrb[5].mxu0 }
 0x109   :  { %v209_v47 = vadd.f32 %v1006_v29, %v208_v46  ;;  %1189 = vmatprep.mubr.bf16.mxu1 %v271_v44  ;;  %v1164_v48 = vpop.f32.mrb[6].mxu0 }
 0x10a   :  { %v261_v49 = vmax.f32 %v217_v45, 0.0  ;;  %v220_v50 = vadd.f32 %v1164_v48, %v1006_v29  ;;  %1190 = vmatmul.mubr.bf16.vlgmr.msra.gmra.mrb[0].mxu1 %v272_v42  ;;  %v211_v51 = vpop.f32.mrb[7].mxu0 }
 0x10b   :  { %v259_v52 = vmax.f32 %v209_v47, 0.0  ;;  %v212_v53 = vadd.f32 %v1006_v29, %v211_v51  ;;  %1213 = vmatpush3.bf16.msra.mxu1 %v1271_v28 }
 0x10c   :  { %v262_v54 = vmax.f32 %v220_v50, 0.0 }
 0x10d   :  { %v260_v55 = vmax.f32 %v212_v53, 0.0 }
 0x10e   :  { %v274_v56 = vpack.c.bf16 %v262_v54, %v261_v49 }
 0x10f   :  { %v273_v57 = vpack.c.bf16 %v260_v55, %v259_v52  ;;  %v1167_v58 = vpop.f32.mrb[8].mxu0 }
 0x110   :  { %v233_v59 = vadd.f32 %v1167_v58, %v1006_v29  ;;  %v224_v60 = vpop.f32.mrb[9].mxu0 }
 0x111   :  { %1193 = vmatprep.mubr.bf16.mxu1 %v273_v57  ;;  %v225_v61 = vadd.f32 %v1006_v29, %v224_v60  ;;  %v1168_v62 = vpop.f32.mrb[10].mxu0 }
 0x112   :  { %1194 = vmatmul.mubr.bf16.gmra.mrb[4].mxu1 %v274_v56  ;;  %v265_v63 = vmax.f32 %v233_v59, 0.0  ;;  %v236_v0 = vadd.f32 %v1168_v62, %v1006_v29  ;;  %v227_v1 = vpop.f32.mrb[11].mxu0 }
 0x113   :  { %v263_v2 = vmax.f32 %v225_v61, 0.0  ;;  %v228_v3 = vadd.f32 %v1006_v29, %v227_v1 }
 0x114   :  { %v266_v4 = vmax.f32 %v236_v0, 0.0 }
 0x115   :  { %v264_v5 = vmax.f32 %v228_v3, 0.0 }
 0x116   :  { %v276_v6 = vpack.c.bf16 %v266_v4, %v265_v63 }
 0x117   :  { %v275_v7 = vpack.c.bf16 %v264_v5, %v263_v2  ;;  %v1171_v8 = vpop.f32.mrb[12].mxu0 }
 0x118   :  { %v249_v9 = vadd.f32 %v1171_v8, %v1006_v29  ;;  %v240_v10 = vpop.f32.mrb[13].mxu0 }
 0x119   :  { %1197 = vmatprep.mubr.bf16.mxu1 %v275_v7  ;;  %v241_v11 = vadd.f32 %v1006_v29, %v240_v10  ;;  %v1172_v12 = vpop.f32.mrb[14].mxu0 }
 0x11a   :  { %1198 = vmatmul.mubr.bf16.gmra.mrb[8].mxu1 %v276_v6  ;;  %v269_v13 = vmax.f32 %v249_v9, 0.0  ;;  %v252_v14 = vadd.f32 %v1172_v12, %v1006_v29  ;;  %v243_v15 = vpop.f32.mrb[15].mxu0 }
 0x11b   :  { %v267_v16 = vmax.f32 %v241_v11, 0.0  ;;  %v244_v17 = vadd.f32 %v1006_v29, %v243_v15  ;;  %v1272_v29 = vld [vmem:[#allocation5 + $0x48] sm:$0xff]  }
 0x11c   :  { %v270_v18 = vmax.f32 %v252_v14, 0.0  ;;  %1206 = vmatprep.subr.bf16.mxu1 %v1272_v29 }
 0x11d   :  { %v268_v19 = vmax.f32 %v244_v17, 0.0  ;;  %1214 = vmatpush3.bf16.msra.mxu1 %v1273_v30 }
 0x11e   :  { %v278_v20 = vpack.c.bf16 %v270_v18, %v269_v13  ;;  %1207 = vmatprep.subr.bf16.mxu1 %v1274_v31 }
 0x11f   :  { %v277_v21 = vpack.c.bf16 %v268_v19, %v267_v16 }
 0x121   :  { %1201 = vmatprep.mubr.bf16.mxu1 %v277_v21  ;;  %1215 = vmatpush3.bf16.msra.mxu1 %v1275_v32 }
 0x122   :  { %1202 = vmatmul.mubr.bf16.gmra.mrb[12].mxu1 %v278_v20  ;;  %1208 = vmatprep.subr.bf16.mxu1 %v1276_v33 }
 0x125   :  { %1216 = vmatpush3.bf16.msra.mxu1 %v1277_v34 }
 0x126   :  { %1209 = vmatprep.subr.bf16.mxu1 %v1278_v35 }
 0x129   :  { %1217 = vmatpush3.bf16.msra.mxu1 %v1506_v36 }
 0x12a   :  { %1210 = vmatprep.subr.bf16.mxu1 %v1508_v37 }
 0x1dd   :  { %v1191_v39 = vpop.f32.mrb[0].mxu1 }
 0x1de   :  { %v393_v40 = vadd.f32 %v1191_v39, %v1515_v38  ;;  %v384_v41 = vpop.f32.mrb[1].mxu1 }
 0x1df   :  { %v385_v42 = vadd.f32 %v1515_v38, %v384_v41  ;;  %v1192_v43 = vpop.f32.mrb[2].mxu1 }
 0x1e0   :  { %v396_v44 = vadd.f32 %v1192_v43, %v1515_v38  ;;  %v387_v45 = vpop.f32.mrb[3].mxu1  ;;  %v449_v47 = vmax.f32 %v393_v40, 0.0 }
 0x1e1   :  { %v388_v46 = vadd.f32 %v1515_v38, %v387_v45  ;;  %v447_v49 = vmax.f32 %v385_v42, 0.0 }
 0x1e2   :  { %v450_v48 = vmax.f32 %v396_v44, 0.0 }
 0x1e3   :  { %v448_v50 = vmax.f32 %v388_v46, 0.0 }
 0x1e4   :  { %v464_v51 = vpack.c.bf16 %v450_v48, %v449_v47 }
 0x1e5   :  { %v463_v52 = vpack.c.bf16 %v448_v50, %v447_v49  ;;  %v1195_v53 = vpop.f32.mrb[4].mxu1 }
 0x1e6   :  { %v409_v54 = vadd.f32 %v1195_v53, %v1515_v38  ;;  %v400_v55 = vpop.f32.mrb[5].mxu1 }
 0x1e7   :  { %v401_v56 = vadd.f32 %v1515_v38, %v400_v55  ;;  %612 = vmatmul.mubr.bf16.vlgmr.msra.gmra.mrb[16].mxu0 %v463_v52  ;;  %v1196_v57 = vpop.f32.mrb[6].mxu1 }
 0x1e8   :  { %v453_v58 = vmax.f32 %v409_v54, 0.0  ;;  %v412_v59 = vadd.f32 %v1196_v57, %v1515_v38  ;;  %v403_v60 = vpop.f32.mrb[7].mxu1  ;;  %621 = vmatprep.mubr.bf16.mxu0 %v1364_v26  ;;  %1092 = vmatpush3.bf16.msra.mxu0 %v1271_v28 }
 0x1e9   :  { %v451_v61 = vmax.f32 %v401_v56, 0.0  ;;  %v404_v62 = vadd.f32 %v1515_v38, %v403_v60  ;;  %1093 = vmatprep.subr.bf16.mxu0 %v1272_v29 }
 0x1ea   :  { %v454_v63 = vmax.f32 %v412_v59, 0.0 }
 0x1eb   :  { %v452_v0 = vmax.f32 %v404_v62, 0.0 }
 0x1ec   :  { %v466_v1 = vpack.c.bf16 %v454_v63, %v453_v58  ;;  %1094 = vmatpush3.bf16.msra.mxu0 %v1273_v30 }
 0x1ed   :  { %v465_v2 = vpack.c.bf16 %v452_v0, %v451_v61  ;;  %v1199_v3 = vpop.f32.mrb[8].mxu1  ;;  %1095 = vmatprep.subr.bf16.mxu0 %v1274_v31 }
 0x1ee   :  { %v425_v4 = vadd.f32 %v1199_v3, %v1515_v38  ;;  %v416_v5 = vpop.f32.mrb[9].mxu1 }
 0x1ef   :  { %622 = vmatmul.mubr.bf16.gmra.mrb[20].mxu0 %v464_v51  ;;  %v417_v6 = vadd.f32 %v1515_v38, %v416_v5  ;;  %v1200_v7 = vpop.f32.mrb[10].mxu1 }
 0x1f0   :  { %v457_v8 = vmax.f32 %v425_v4, 0.0  ;;  %631 = vmatprep.mubr.bf16.mxu0 %v1364_v26  ;;  %v428_v9 = vadd.f32 %v1200_v7, %v1515_v38  ;;  %v419_v10 = vpop.f32.mrb[11].mxu1  ;;  %1096 = vmatpush3.bf16.msra.mxu0 %v1275_v32  ;;  %v1281_v32 = vld [vmem:[#allocation5 + $0x28] sm:$0xff]  }
 0x1f1   :  { %v455_v11 = vmax.f32 %v417_v6, 0.0  ;;  %v420_v12 = vadd.f32 %v1515_v38, %v419_v10  ;;  %1097 = vmatprep.subr.bf16.mxu0 %v1276_v33  ;;  %1218 = vmatpush3.bf16.msra.mxu1 %v1281_v32  ;;  %v1282_v33 = vld [vmem:[#allocation5 + $0x70] sm:$0xff]  }
 0x1f2   :  { %v458_v13 = vmax.f32 %v428_v9, 0.0  ;;  %1211 = vmatprep.subr.bf16.mxu1 %v1282_v33 }
 0x1f3   :  { %v456_v14 = vmax.f32 %v420_v12, 0.0 }
 0x1f4   :  { %v468_v15 = vpack.c.bf16 %v458_v13, %v457_v8  ;;  %1098 = vmatpush3.bf16.msra.mxu0 %v1277_v34  ;;  %v1283_v34 = vld [vmem:[#allocation5 + $0x30] sm:$0xff]  }
 0x1f5   :  { %v467_v16 = vpack.c.bf16 %v456_v14, %v455_v11  ;;  %v1203_v17 = vpop.f32.mrb[12].mxu1  ;;  %1099 = vmatprep.subr.bf16.mxu0 %v1278_v35  ;;  %1219 = vmatpush3.bf16.msra.mxu1 %v1283_v34  ;;  %v1284_v35 = vld [vmem:[#allocation5 + $0x78] sm:$0xff]  }
 0x1f6   :  { %v441_v18 = vadd.f32 %v1203_v17, %v1515_v38  ;;  %v432_v19 = vpop.f32.mrb[13].mxu1  ;;  %1212 = vmatprep.subr.bf16.mxu1 %v1284_v35 }
 0x1f7   :  { %632 = vmatmul.mubr.bf16.gmra.mrb[24].mxu0 %v465_v2  ;;  %v433_v20 = vadd.f32 %v1515_v38, %v432_v19  ;;  %v1204_v21 = vpop.f32.mrb[14].mxu1 }
 0x1f8   :  { %641 = vmatprep.mubr.bf16.mxu0 %v1364_v26  ;;  %v461_v22 = vmax.f32 %v441_v18, 0.0  ;;  %v444_v23 = vadd.f32 %v1204_v21, %v1515_v38  ;;  %v435_v24 = vpop.f32.mrb[15].mxu1  ;;  %1100 = vmatpush3.bf16.msra.mxu0 %v1506_v36  ;;  %v1285_v36 = vld [vmem:[#allocation5 + $0x38] sm:$0xff]  }
 0x1f9   :  { %v459_v25 = vmax.f32 %v433_v20, 0.0  ;;  %v436_v27 = vadd.f32 %v1515_v38, %v435_v24  ;;  %1101 = vmatprep.subr.bf16.mxu0 %v1508_v37  ;;  %1220 = vmatpush3.bf16.msra.mxu1 %v1285_v36  ;;  %v489_v37 = vlaneseq }
 0x1fa   :  { %v462_v28 = vmax.f32 %v444_v23, 0.0 }
 0x1fb   :  { %v460_v29 = vmax.f32 %v436_v27, 0.0  ;;  %v490_v38 = vshrl.u32 %v489_v37, 7 }
 0x1fc   :  { %v470_v30 = vpack.c.bf16 %v462_v28, %v461_v22  ;;  %1102 = vmatpush3.bf16.msra.mxu0 %v1281_v32 }
 0x1fd   :  { %v469_v31 = vpack.c.bf16 %v460_v29, %v459_v25  ;;  %1103 = vmatprep.subr.bf16.mxu0 %v1282_v33  ;;  %v491_v39 = vsub.s32 0, %v490_v38  ;;  %v495_v40 = vsub.s32 1, %v490_v38 }
 0x1ff   :  { %642 = vmatmul.mubr.bf16.gmra.mrb[28].mxu0 %v466_v1 }
 0x200   :  { %651 = vmatprep.mubr.bf16.mxu0 %v1364_v26  ;;  %1104 = vmatpush3.bf16.msra.mxu0 %v1283_v34 }
 0x201   :  { %1105 = vmatprep.subr.bf16.mxu0 %v1284_v35 }
 0x204   :  { %1106 = vmatpush3.bf16.msra.mxu0 %v1285_v36 }
 0x207   :  { %652 = vmatmul.mubr.bf16.gmra.mrb[32].mxu0 %v467_v16 }
 0x208   :  { %661 = vmatprep.mubr.bf16.mxu0 %v1364_v26 }
 0x20f   :  { %662 = vmatmul.mubr.bf16.gmra.mrb[36].mxu0 %v468_v15 }
 0x210   :  { %671 = vmatprep.mubr.bf16.mxu0 %v1364_v26 }
 0x217   :  { %672 = vmatmul.mubr.bf16.gmra.mrb[40].mxu0 %v469_v31 }
 0x218   :  { %681 = vmatprep.mubr.bf16.mxu0 %v1364_v26  ;;  %v487_v26 = vld [vmem:[%s1623_s6] sm:$0x3] }
 0x219   :  { %v1545_v41 = vrot.slane %v487_v26, %v491_v39  ;;  %v1547_v42 = vrot.slane %v487_v26, %v495_v40 }
 0x21f   :  { %682 = vmatmul.mubr.bf16.gmra.mrb[44].mxu0 %v470_v30 }
 0x2ba   :  { %v613_v43 = vpop.f32.mrb[16].mxu0 }
 0x2bb   :  { %v614_v44 = vadd.f32 %v613_v43, %v1545_v41  ;;  %v615_v45 = vpop.f32.mrb[17].mxu0 }
 0x2bc   :  { %v616_v46 = vadd.f32 %v615_v45, %v1547_v42  ;;  %v617_v47 = vpop.f32.mrb[18].mxu0 }
 0x2bd   :  { %v618_v48 = vadd.f32 %v617_v47, %v1545_v41  ;;  %v619_v49 = vpop.f32.mrb[19].mxu0  ;;  %v692_v51 = vmax.f32 %v614_v44, 0.0 }
 0x2be   :  { %v620_v50 = vadd.f32 %v619_v49, %v1547_v42  ;;  %v693_v53 = vmax.f32 %v616_v46, 0.0 }
 0x2bf   :  { %v694_v52 = vmax.f32 %v618_v48, 0.0 }
 0x2c0   :  { %v695_v54 = vmax.f32 %v620_v50, 0.0 }
 0x2c1   :  { %v724_v55 = vpack.c.bf16 %v694_v52, %v692_v51 }
 0x2c2   :  { %v725_v56 = vpack.c.bf16 %v695_v54, %v693_v53  ;;  %v623_v57 = vpop.f32.mrb[20].mxu0 }
 0x2c3   :  { %v624_v58 = vadd.f32 %v623_v57, %v1545_v41  ;;  %v625_v59 = vpop.f32.mrb[21].mxu0 }
 0x2c4   :  { %v626_v60 = vadd.f32 %v625_v59, %v1547_v42  ;;  %v627_v61 = vpop.f32.mrb[22].mxu0  ;;  %907 = vmatprep.mubr.bf16.mxu0 %v725_v56 }
 0x2c5   :  { %v628_v62 = vadd.f32 %v627_v61, %v1545_v41  ;;  %v629_v63 = vpop.f32.mrb[23].mxu0  ;;  %908 = vmatmul.mubr.bf16.vlgmr.msra.gmra.mrb[48].mxu0 %v724_v55  ;;  %v696_v1 = vmax.f32 %v624_v58, 0.0 }
 0x2c6   :  { %v630_v0 = vadd.f32 %v629_v63, %v1547_v42  ;;  %v697_v3 = vmax.f32 %v626_v60, 0.0 }
 0x2c7   :  { %v698_v2 = vmax.f32 %v628_v62, 0.0 }
 0x2c8   :  { %v699_v4 = vmax.f32 %v630_v0, 0.0 }
 0x2c9   :  { %v726_v5 = vpack.c.bf16 %v698_v2, %v696_v1 }
 0x2ca   :  { %v727_v6 = vpack.c.bf16 %v699_v4, %v697_v3  ;;  %v633_v7 = vpop.f32.mrb[24].mxu0 }
 0x2cb   :  { %v634_v8 = vadd.f32 %v633_v7, %v1545_v41  ;;  %v635_v9 = vpop.f32.mrb[25].mxu0 }
 0x2cc   :  { %v636_v10 = vadd.f32 %v635_v9, %v1547_v42  ;;  %v637_v11 = vpop.f32.mrb[26].mxu0  ;;  %915 = vmatprep.mubr.bf16.mxu1 %v727_v6 }
 0x2cd   :  { %v638_v12 = vadd.f32 %v637_v11, %v1545_v41  ;;  %v639_v13 = vpop.f32.mrb[27].mxu0  ;;  %916 = vmatmul.mubr.bf16.vlgmr.msra.gmra.mrb[16].mxu1 %v726_v5  ;;  %v700_v15 = vmax.f32 %v634_v8, 0.0 }
 0x2ce   :  { %v640_v14 = vadd.f32 %v639_v13, %v1547_v42  ;;  %v701_v17 = vmax.f32 %v636_v10, 0.0 }
 0x2cf   :  { %v702_v16 = vmax.f32 %v638_v12, 0.0 }
 0x2d0   :  { %v703_v18 = vmax.f32 %v640_v14, 0.0 }
 0x2d1   :  { %v728_v19 = vpack.c.bf16 %v702_v16, %v700_v15 }
 0x2d2   :  { %v729_v20 = vpack.c.bf16 %v703_v18, %v701_v17  ;;  %v643_v21 = vpop.f32.mrb[28].mxu0 }
 0x2d3   :  { %v644_v22 = vadd.f32 %v643_v21, %v1545_v41  ;;  %v645_v23 = vpop.f32.mrb[29].mxu0 }
 0x2d4   :  { %v646_v24 = vadd.f32 %v645_v23, %v1547_v42  ;;  %v647_v25 = vpop.f32.mrb[30].mxu0  ;;  %923 = vmatprep.mubr.bf16.mxu1 %v729_v20 }
 0x2d5   :  { %v648_v27 = vadd.f32 %v647_v25, %v1545_v41  ;;  %v649_v28 = vpop.f32.mrb[31].mxu0  ;;  %924 = vmatmul.mubr.bf16.gmra.mrb[20].mxu1 %v728_v19  ;;  %v704_v30 = vmax.f32 %v644_v22, 0.0 }
 0x2d6   :  { %v650_v29 = vadd.f32 %v649_v28, %v1547_v42  ;;  %v705_v32 = vmax.f32 %v646_v24, 0.0 }
 0x2d7   :  { %v706_v31 = vmax.f32 %v648_v27, 0.0 }
 0x2d8   :  { %v707_v33 = vmax.f32 %v650_v29, 0.0 }
 0x2d9   :  { %v730_v34 = vpack.c.bf16 %v706_v31, %v704_v30  ;;  %v1584_v31 = vld [vmem:[%s1625_s8] ss:$0 sm:$0xff]  ;;  %s1365_s8 = smov [#allocation7]  }
 0x2da   :  { %v731_v35 = vpack.c.bf16 %v707_v33, %v705_v32  ;;  %v653_v36 = vpop.f32.mrb[32].mxu0  ;;  %s993_s30 = sshll.u32 %s1365_s8, 4  ;;  %s994_s30 = int_to_ptr.vmem [resolvable:$true] %s993_s30 }
 0x2db   :  { %v654_v37 = vadd.f32 %v653_v36, %v1545_v41  ;;  %v655_v38 = vpop.f32.mrb[33].mxu0  ;;  %s1330_s11 = scalar_lea.vmem %s994_s30, 2048  ;;  %p1335_p3 = scmp.lt.s32.totalorder %s994_s30, %s994_s30 }
 0x2dc   :  { %v656_v39 = vadd.f32 %v655_v38, %v1547_v42  ;;  %v657_v26 = vpop.f32.mrb[34].mxu0  ;;  %931 = vmatprep.mubr.bf16.mxu1 %v731_v35  ;;  %p1331_p2 = scmp.ne.s32.totalorder %s994_s30, %s1330_s11  ;;  %p1336_p4 = scmp.lt.s32.totalorder %s1330_s11, %s1330_s11 }
 0x2dd   :  { %v658_v40 = vadd.f32 %v657_v26, %v1545_v41  ;;  %v659_v43 = vpop.f32.mrb[35].mxu0  ;;  %932 = vmatmul.mubr.bf16.gmra.mrb[24].mxu1 %v730_v34  ;;  %v708_v45 = vmax.f32 %v654_v37, 0.0 }
 0x2de   :  { %v660_v44 = vadd.f32 %v659_v43, %v1547_v42  ;;  %v709_v47 = vmax.f32 %v656_v39, 0.0  ;;  %p1337_p5 = por %p1336_p4, %p1335_p3 }
 0x2df   :  { %v710_v46 = vmax.f32 %v658_v40, 0.0 }
 0x2e0   :  { %v711_v48 = vmax.f32 %v660_v44, 0.0  ;;  %p1338_p6 = pnand %p1337_p5, %p1331_p2 }
 0x2e1   :  { %v732_v49 = vpack.c.bf16 %v710_v46, %v708_v45 }
 0x2e2   :  { %v733_v50 = vpack.c.bf16 %v711_v48, %v709_v47  ;;  %v663_v51 = vpop.f32.mrb[36].mxu0 }
 0x2e3   :  { %v664_v52 = vadd.f32 %v663_v51, %v1545_v41  ;;  %v665_v53 = vpop.f32.mrb[37].mxu0 }
 0x2e4   :  { %v666_v54 = vadd.f32 %v665_v53, %v1547_v42  ;;  %v667_v55 = vpop.f32.mrb[38].mxu0  ;;  %939 = vmatprep.mubr.bf16.mxu1 %v733_v50 }
 0x2e5   :  { %v668_v56 = vadd.f32 %v667_v55, %v1545_v41  ;;  %v669_v57 = vpop.f32.mrb[39].mxu0  ;;  %940 = vmatmul.mubr.bf16.gmra.mrb[28].mxu1 %v732_v49  ;;  %v712_v59 = vmax.f32 %v664_v52, 0.0 }
 0x2e6   :  { %v670_v58 = vadd.f32 %v669_v57, %v1547_v42  ;;  %v713_v61 = vmax.f32 %v666_v54, 0.0 }
 0x2e7   :  { %v714_v60 = vmax.f32 %v668_v56, 0.0 }
 0x2e8   :  { %v715_v62 = vmax.f32 %v670_v58, 0.0 }
 0x2e9   :  { %v734_v63 = vpack.c.bf16 %v714_v60, %v712_v59 }
 0x2ea   :  { %v735_v0 = vpack.c.bf16 %v715_v62, %v713_v61  ;;  %v673_v1 = vpop.f32.mrb[40].mxu0 }
 0x2eb   :  { %v674_v2 = vadd.f32 %v673_v1, %v1545_v41  ;;  %v675_v3 = vpop.f32.mrb[41].mxu0 }
 0x2ec   :  { %v676_v4 = vadd.f32 %v675_v3, %v1547_v42  ;;  %v677_v5 = vpop.f32.mrb[42].mxu0  ;;  %947 = vmatprep.mubr.bf16.mxu1 %v735_v0 }
 0x2ed   :  { %v678_v6 = vadd.f32 %v677_v5, %v1545_v41  ;;  %v679_v7 = vpop.f32.mrb[43].mxu0  ;;  %948 = vmatmul.mubr.bf16.gmra.mrb[32].mxu1 %v734_v63  ;;  %v716_v9 = vmax.f32 %v674_v2, 0.0 }
 0x2ee   :  { %v680_v8 = vadd.f32 %v679_v7, %v1547_v42  ;;  %v717_v11 = vmax.f32 %v676_v4, 0.0 }
 0x2ef   :  { %v718_v10 = vmax.f32 %v678_v6, 0.0 }
 0x2f0   :  { %v719_v12 = vmax.f32 %v680_v8, 0.0 }
 0x2f1   :  { %v736_v13 = vpack.c.bf16 %v718_v10, %v716_v9 }
 0x2f2   :  { %v737_v14 = vpack.c.bf16 %v719_v12, %v717_v11  ;;  %v683_v15 = vpop.f32.mrb[44].mxu0 }
 0x2f3   :  { %v684_v16 = vadd.f32 %v683_v15, %v1545_v41  ;;  %v685_v17 = vpop.f32.mrb[45].mxu0 }
 0x2f4   :  { %v686_v18 = vadd.f32 %v685_v17, %v1547_v42  ;;  %v687_v19 = vpop.f32.mrb[46].mxu0  ;;  %955 = vmatprep.mubr.bf16.mxu1 %v737_v14 }
 0x2f5   :  { %v688_v20 = vadd.f32 %v687_v19, %v1545_v41  ;;  %v689_v21 = vpop.f32.mrb[47].mxu0  ;;  %956 = vmatmul.mubr.bf16.gmra.mrb[36].mxu1 %v736_v13  ;;  %v720_v23 = vmax.f32 %v684_v16, 0.0 }
 0x2f6   :  { %v690_v22 = vadd.f32 %v689_v21, %v1547_v42  ;;  %v721_v25 = vmax.f32 %v686_v18, 0.0 }
 0x2f7   :  { %v722_v24 = vmax.f32 %v688_v20, 0.0 }
 0x2f8   :  { %v723_v27 = vmax.f32 %v690_v22, 0.0 }
 0x2f9   :  { %v738_v28 = vpack.c.bf16 %v722_v24, %v720_v23 }
 0x2fa   :  { %v739_v29 = vpack.c.bf16 %v723_v27, %v721_v25 }
 0x2fc   :  { %963 = vmatprep.mubr.bf16.mxu1 %v739_v29 }
 0x2fd   :  { %964 = vmatmul.mubr.bf16.gmra.mrb[40].mxu1 %v738_v28 }
 0x398   :  { %v1107_v30 = vpop.f32.mrb[48].mxu0 }
 0x399   :  { %v1108_v32 = vpop.f32.mrb[49].mxu0 }
 0x39a   :  { %v1109_v41 = vadd.f32 %v1108_v32, %v1107_v30  ;;  %v1110_v33 = vpop.f32.mrb[50].mxu0 }
 0x39b   :  { %v1111_v34 = vpop.f32.mrb[51].mxu0 }
 0x39c   :  { %v910_v42 = vadd.f32 %v1109_v41, %v1584_v31  ;;  %v1112_v35 = vadd.f32 %v1111_v34, %v1110_v33 }
 0x39e   :  { %972 = vst [vmem:[#allocation7] sm:$0xff] %v910_v42  ;;  %v913_v36 = vadd.f32 %v1112_v35, %v1584_v31 }
 0x3a0   :  { %973 = vst [vmem:[#allocation7 + $0x8] sm:$0xff] %v913_v36  ;;  %v1113_v37 = vpop.f32.mrb[16].mxu1 }
 0x3a1   :  { %v1114_v38 = vpop.f32.mrb[17].mxu1 }
 0x3a2   :  { %v1115_v39 = vadd.f32 %v1114_v38, %v1113_v37  ;;  %v1116_v26 = vpop.f32.mrb[18].mxu1 }
 0x3a3   :  { %v1117_v40 = vpop.f32.mrb[19].mxu1 }
 0x3a4   :  { %v918_v43 = vadd.f32 %v1115_v39, %v1584_v31  ;;  %v1118_v44 = vadd.f32 %v1117_v40, %v1116_v26 }
 0x3a6   :  { %974 = vst [vmem:[#allocation7 + $0x10] sm:$0xff] %v918_v43  ;;  %v921_v45 = vadd.f32 %v1118_v44, %v1584_v31 }
 0x3a8   :  { %975 = vst [vmem:[#allocation7 + $0x18] sm:$0xff] %v921_v45  ;;  %v1119_v46 = vpop.f32.mrb[20].mxu1 }
 0x3a9   :  { %v1120_v47 = vpop.f32.mrb[21].mxu1 }
 0x3aa   :  { %v1121_v48 = vadd.f32 %v1120_v47, %v1119_v46  ;;  %v1122_v49 = vpop.f32.mrb[22].mxu1 }
 0x3ab   :  { %v1123_v50 = vpop.f32.mrb[23].mxu1 }
 0x3ac   :  { %v926_v51 = vadd.f32 %v1121_v48, %v1584_v31  ;;  %v1124_v52 = vadd.f32 %v1123_v50, %v1122_v49 }
 0x3ae   :  { %976 = vst [vmem:[#allocation7 + $0x20] sm:$0xff] %v926_v51  ;;  %v929_v53 = vadd.f32 %v1124_v52, %v1584_v31 }
 0x3b0   :  { %977 = vst [vmem:[#allocation7 + $0x28] sm:$0xff] %v929_v53  ;;  %v1125_v54 = vpop.f32.mrb[24].mxu1 }
 0x3b1   :  { %v1126_v55 = vpop.f32.mrb[25].mxu1 }
 0x3b2   :  { %v1127_v56 = vadd.f32 %v1126_v55, %v1125_v54  ;;  %v1128_v57 = vpop.f32.mrb[26].mxu1 }
 0x3b3   :  { %v1129_v58 = vpop.f32.mrb[27].mxu1 }
 0x3b4   :  { %v934_v59 = vadd.f32 %v1127_v56, %v1584_v31  ;;  %v1130_v60 = vadd.f32 %v1129_v58, %v1128_v57 }
 0x3b6   :  { %978 = vst [vmem:[#allocation7 + $0x30] sm:$0xff] %v934_v59  ;;  %v937_v61 = vadd.f32 %v1130_v60, %v1584_v31 }
 0x3b8   :  { %979 = vst [vmem:[#allocation7 + $0x38] sm:$0xff] %v937_v61  ;;  %v1131_v62 = vpop.f32.mrb[28].mxu1 }
 0x3b9   :  { %v1132_v63 = vpop.f32.mrb[29].mxu1 }
 0x3ba   :  { %v1133_v0 = vadd.f32 %v1132_v63, %v1131_v62  ;;  %v1134_v1 = vpop.f32.mrb[30].mxu1 }
 0x3bb   :  { %v1135_v2 = vpop.f32.mrb[31].mxu1 }
 0x3bc   :  { %v942_v3 = vadd.f32 %v1133_v0, %v1584_v31  ;;  %v1136_v4 = vadd.f32 %v1135_v2, %v1134_v1 }
 0x3be   :  { %980 = vst [vmem:[#allocation7 + $0x40] sm:$0xff] %v942_v3  ;;  %v945_v5 = vadd.f32 %v1136_v4, %v1584_v31 }
 0x3c0   :  { %981 = vst [vmem:[#allocation7 + $0x48] sm:$0xff] %v945_v5  ;;  %v1137_v6 = vpop.f32.mrb[32].mxu1 }
 0x3c1   :  { %v1138_v7 = vpop.f32.mrb[33].mxu1 }
 0x3c2   :  { %v1139_v8 = vadd.f32 %v1138_v7, %v1137_v6  ;;  %v1140_v9 = vpop.f32.mrb[34].mxu1 }
 0x3c3   :  { %v1141_v10 = vpop.f32.mrb[35].mxu1 }
 0x3c4   :  { %v950_v11 = vadd.f32 %v1139_v8, %v1584_v31  ;;  %v1142_v12 = vadd.f32 %v1141_v10, %v1140_v9 }
 0x3c6   :  { %982 = vst [vmem:[#allocation7 + $0x50] sm:$0xff] %v950_v11  ;;  %v953_v13 = vadd.f32 %v1142_v12, %v1584_v31 }
 0x3c8   :  { %983 = vst [vmem:[#allocation7 + $0x58] sm:$0xff] %v953_v13  ;;  %v1143_v14 = vpop.f32.mrb[36].mxu1 }
 0x3c9   :  { %v1144_v15 = vpop.f32.mrb[37].mxu1 }
 0x3ca   :  { %v1145_v16 = vadd.f32 %v1144_v15, %v1143_v14  ;;  %v1146_v17 = vpop.f32.mrb[38].mxu1 }
 0x3cb   :  { %v1147_v18 = vpop.f32.mrb[39].mxu1 }
 0x3cc   :  { %v958_v19 = vadd.f32 %v1145_v16, %v1584_v31  ;;  %v1148_v20 = vadd.f32 %v1147_v18, %v1146_v17 }
 0x3ce   :  { %984 = vst [vmem:[#allocation7 + $0x60] sm:$0xff] %v958_v19  ;;  %v961_v21 = vadd.f32 %v1148_v20, %v1584_v31 }
 0x3d0   :  { %985 = vst [vmem:[#allocation7 + $0x68] sm:$0xff] %v961_v21  ;;  %v1149_v22 = vpop.f32.mrb[40].mxu1 }
 0x3d1   :  { %v1150_v23 = vpop.f32.mrb[41].mxu1 }
 0x3d2   :  { %v1151_v24 = vadd.f32 %v1150_v23, %v1149_v22  ;;  %v1152_v25 = vpop.f32.mrb[42].mxu1 }
 0x3d3   :  { %v1153_v27 = vpop.f32.mrb[43].mxu1 }
 0x3d4   :  { %v966_v28 = vadd.f32 %v1151_v24, %v1584_v31  ;;  %v1154_v29 = vadd.f32 %v1153_v27, %v1152_v25 }
 0x3d6   :  { %986 = vst [vmem:[#allocation7 + $0x70] sm:$0xff] %v966_v28  ;;  %v969_v30 = vadd.f32 %v1154_v29, %v1584_v31 }
 0x3d8   :  { %987 = vst [vmem:[#allocation7 + $0x78] sm:$0xff] %v969_v30 }
 0x3d9   :  { %1341 = shalt.err (!%p1338_p6)
}
 0x3da   :  { %s1342_s10 = scalar_lea.hbm %s1626_s9, 2048 }
 0x3db   :  { %p1343_p7 = scmp.ne.s32.totalorder %s1626_s9, %s1342_s10  ;;  %p1346_p8 = scmp.lt.u32.totalorder %s1342_s10, %s1626_s9 }
 0x3dd   :  { %p1348_p9 = pnand %p1346_p8, %p1343_p7 }
 0x3df   :  { %1351 = shalt.err (!%p1348_p9)
}
 0x3e0   :  { %999 = dma.vmem_to_hbm [thread:$0]  %s994_s30, 2048, %s1626_s9, [#allocation4], %s1359_s19, %s1359_s19, %s1360_s20  }
 0x3e1   :  { %1356 = dma.done.wait [#allocation4], 2048  }
 0x3e2   :  { %1357 = vsyncadd [#allocation4], 4294965248 }
 0x3e3   :  { %1003 = vsyncpa [#allocation3], 1 }
 0x3e4   :  { %1004 = vsyncpa [#allocation6], 1 }
 0x3e5   :  { %1005 = vsyncpa [#allocation4], 1 }

</bundles_post_ra>
